<compile_context>
chip_gen: v7x
topology: tpu7x:2x2x1
jax: 0.10.0
libtpu: 0.0.40
codegen_flags: <defaults>
</compile_context>

<pallas_src>
import functools
import math

import jax
import jax.numpy as jnp
import numpy as np
from jax.experimental import pallas as pl
from jax.experimental.pallas import tpu as pltpu

_LANE = 128


def _round_up(x: int, m: int) -> int:
    return -(-x // m) * m


def _sublane_multiple(dtype) -> int:
    """Minimum sublane tile multiple for dtype: 8 (32-bit), 16 (16-bit), 32 (8-bit)."""
    bits = np.dtype(dtype).itemsize * 8
    return max(8, 256 // bits)


def _vmem_capacity_bytes() -> int:
    try:
        return int(pltpu.get_tpu_info().vmem_capacity_bytes)
    except Exception:
        return 64 * 1024 * 1024  # conservative: v7x per-TensorCore VMEM


def _budgets():
    cap = _vmem_capacity_bytes()
    # Double-buffered *input* footprint budget: ~40% of VMEM, capped at 48 MiB.
    # (~25 MiB on v7x's 64 MiB, 48 MiB on v5e/v6e's 128 MiB.)
    in_budget = min((cap * 2) // 5, 48 * 1024 * 1024)
    vmem_limit = min((cap * 3) // 4, 96 * 1024 * 1024)
    return cap, in_budget, vmem_limit


# ---------------------------------------------------------------------------
# Kernels
# ---------------------------------------------------------------------------
def _lane_max_kernel(x_ref, o_ref):
    # x_ref: (tm, tn). Reduce over lanes; accumulate a running max over the
    # last ("arbitrary") N-chunk grid axis in the VMEM-resident output block.
    part = jnp.max(x_ref[...], axis=-1, keepdims=True)
    k = pl.program_id(1)

    @pl.when(k == 0)
    def _():
        o_ref[...] = part

    @pl.when(k != 0)
    def _():
        o_ref[...] = jnp.maximum(o_ref[...], part)


def _sublane_max_kernel(x_ref, o_ref):
    # x_ref: (ta, tn, tb). In-layout reduction over the sublane axis (axis 1)
    # for dim != -1 — avoids any wrapper-side transpose copy.
    part = jnp.max(x_ref[...], axis=1, keepdims=True)
    k = pl.program_id(2)

    @pl.when(k == 0)
    def _():
        o_ref[...] = part

    @pl.when(k != 0)
    def _():
        o_ref[...] = jnp.maximum(o_ref[...], part)


# ---------------------------------------------------------------------------
# Tile planning
# ---------------------------------------------------------------------------
def _plan_last_axis(m: int, n: int, dtype):
    sub = _sublane_multiple(dtype)
    nbytes = np.dtype(dtype).itemsize
    cap, in_budget, vmem_limit = _budgets()

    # Reduction chunk on lanes: prefer the full extent; only chunk when a
    # full-width tile would not leave room for >=512 rows, and only with a
    # chunk size that divides N exactly (partial chunks would fold garbage
    # into valid rows).
    tn = n
    if 2 * 512 * _round_up(n, _LANE) * nbytes > in_budget:
        for cand in (8192, 4096, 2048, 1024, 512, 256, 128):
            if n % cand == 0 and 2 * 512 * cand * nbytes <= in_budget:
                tn = cand
                break

    per_row = 2 * _round_up(tn, _LANE) * nbytes  # double-buffered bytes / row
    tm = max(sub, in_budget // per_row)
    tm = min(tm, 1024)  # diminishing returns past ~1024 rows
    if tm >= m:
        tm = m  # full extent: always a legal block dim
        # Keep >=2 parallel steps so v7x's second TensorCore gets work.
        if m >= 2 * sub:
            tm = _round_up((m + 1) // 2, sub)
    else:
        tm = max(sub, (tm // sub) * sub)

    needed = 2 * tm * _round_up(tn, _LANE) * nbytes + (4 << 20)
    vmem_limit = min(cap, max(vmem_limit, needed))
    return tm, tn, vmem_limit


def _plan_mid_axis(a: int, n: int, b: int, dtype):
    sub = _sublane_multiple(dtype)
    nbytes = np.dtype(dtype).itemsize
    cap, in_budget, vmem_limit = _budgets()

    # Lane axis = trailing (kept) dims.
    tb = b if b <= 2048 else 2048
    lane_w = _round_up(tb, _LANE)

    # Reduction chunk on sublanes: full extent unless it blows the budget,
    # otherwise an exact divisor that is a multiple of the sublane packing.
    tn = n
    if 2 * _round_up(n, sub) * lane_w * nbytes > in_budget:
        for cand in (4096, 2048, 1024, 512, 256, 128, 64, 32, 16, 8):
            if cand % sub == 0 and n % cand == 0 and \
                    2 * cand * lane_w * nbytes <= in_budget:
                tn = cand
                break

    per_slab = 2 * _round_up(tn, sub) * lane_w * nbytes  # per leading row
    ta = max(1, min(a, in_budget // max(per_slab, 1), 256))

    # Keep >=2 parallel grid steps (v7x megacore) when there is enough work.
    if (-(-a // ta)) * (-(-b // tb)) < 2 and a >= 2:
        ta = (a + 1) // 2

    needed = ta * per_slab + (4 << 20)
    vmem_limit = min(cap, max(vmem_limit, needed))
    return ta, tn, tb, vmem_limit


# ---------------------------------------------------------------------------
# Wrapper
# ---------------------------------------------------------------------------
@functools.partial(jax.jit, static_argnames=("dim", "keepdim"))
def maxpool(x, dim: int = -1, keepdim: bool = False):
    """Pallas implementation of torch Tensor.max(dim).values (Maxpool module)."""
    ndim = x.ndim
    d = dim % ndim
    shape = x.shape
    n = shape[d]

    if d == ndim - 1:
        # Lane-axis reduction: flatten leading dims -> (M, N). Pure reshape.
        m = int(math.prod(shape[:-1]))
        x2 = x.reshape(m, n)
        tm, tn, vmem_limit = _plan_last_axis(m, n, x.dtype)
        out2 = pl.pallas_call(
            _lane_max_kernel,
            out_shape=jax.ShapeDtypeStruct((m, 1), x.dtype),
            grid_spec=pltpu.PrefetchScalarGridSpec(
                num_scalar_prefetch=0,
                grid=(pl.cdiv(m, tm), n // tn),
                in_specs=[pl.BlockSpec((tm, tn), lambda i, k: (i, k))],
                out_specs=pl.BlockSpec((tm, 1), lambda i, k: (i, 0)),
            ),
            compiler_params=pltpu.CompilerParams(
                dimension_semantics=("parallel", "arbitrary"),
                vmem_limit_bytes=vmem_limit,
            ),
        )(x2)
        out = out2.reshape(shape[:-1])
        if keepdim:
            out = jnp.expand_dims(out, d)
        return out

    # dim != -1: reduce in the original layout over the sublane axis of an
    # (A, N, B) view — no materialized transpose in HBM.
    a = int(math.prod(shape[:d]))
    b = int(math.prod(shape[d + 1:]))
    x3 = x.reshape(a, n, b)
    ta, tn, tb, vmem_limit = _plan_mid_axis(a, n, b, x.dtype)
    out3 = pl.pallas_call(
        _sublane_max_kernel,
        out_shape=jax.ShapeDtypeStruct((a, 1, b), x.dtype),
        grid_spec=pltpu.PrefetchScalarGridSpec(
            num_scalar_prefetch=0,
            grid=(pl.cdiv(a, ta), pl.cdiv(b, tb), n // tn),
            in_specs=[pl.BlockSpec((ta, tn, tb), lambda i, j, k: (i, k, j))],
            out_specs=pl.BlockSpec((ta, 1, tb), lambda i, j, k: (i, 0, j)),
        ),
        compiler_params=pltpu.CompilerParams(
            dimension_semantics=("parallel", "parallel", "arbitrary"),
            vmem_limit_bytes=vmem_limit,
        ),
    )(x3)
    if keepdim:
        return out3.reshape(shape[:d] + (1,) + shape[d + 1:])
    return out3.reshape(shape[:d] + shape[d + 1:])


if __name__ == "__main__":
    key = jax.random.PRNGKey(0)
    x = jax.random.normal(key, (2, 4, 16, 16), dtype=jnp.float32)

    # Default module config: dim=-1, keepdim=False (lane-reduction path).
    y = maxpool(x, dim=-1, keepdim=False)
    jax.block_until_ready(y)
    ref = jnp.max(x, axis=-1)
    assert y.shape == ref.shape, (y.shape, ref.shape)
    assert jnp.allclose(y, ref), "mismatch vs reference (dim=-1)"

    # Non-last axis + keepdim (in-layout sublane-reduction path, no transpose).
    y2 = maxpool(x, dim=1, keepdim=True)
    jax.block_until_ready(y2)
    ref2 = jnp.max(x, axis=1, keepdims=True)
    assert y2.shape == ref2.shape, (y2.shape, ref2.shape)
    assert jnp.allclose(y2, ref2), "mismatch vs reference (dim=1, keepdim)"

    # bf16 + first axis: exercises dtype-aware sublane tiling.
    xb = jax.random.normal(jax.random.PRNGKey(1), (8, 32, 128), dtype=jnp.bfloat16)
    y3 = maxpool(xb, dim=0, keepdim=False)
    jax.block_until_ready(y3)
    ref3 = jnp.max(xb, axis=0)
    assert y3.shape == ref3.shape, (y3.shape, ref3.shape)
    assert jnp.array_equal(y3, ref3), "mismatch vs reference (bf16, dim=0)"

    # TODO(synk): torch Tensor.max(dim) also returns argmax indices; the module's
    # forward only uses values, so only values are implemented here.
    print("KERNEL_OK")
</pallas_src>

<mosaic_0001>
module attributes {stable_mosaic.version = 11 : i64} {
  func.func @_lane_max_kernel(%arg0: i32, %arg1: i32, %arg2: memref<64x16xf32, #tpu.memory_space<vmem>>, %arg3: memref<64x1xf32, #tpu.memory_space<vmem>>) attributes {dimension_semantics = [#tpu.dimension_semantics<parallel>, #tpu.dimension_semantics<arbitrary>], iteration_bounds = array<i64: 2, 1>, scalar_prefetch = 0 : i64, scratch_operands = 0 : i64, tpu.core_type = #tpu.core_type<tc>, window_params = [{transform_indices = @transform_0, window_bounds = array<i64: 64, 16>}, {transform_indices = @transform_1, window_bounds = array<i64: 64, 1>}]} {
    %c0 = arith.constant 0 : index
    %c0_0 = arith.constant 0 : index
    %0 = vector.load %arg2[%c0, %c0_0] : memref<64x16xf32, #tpu.memory_space<vmem>>, vector<64x16xf32>
    %cst = arith.constant dense<0xFF800000> : vector<64xf32>
    %1 = vector.multi_reduction <maximumf>, %0, %cst [1] : vector<64x16xf32> to vector<64xf32>
    %2 = vector.shape_cast %1 : vector<64xf32> to vector<64x1xf32>
    %c0_i32 = arith.constant 0 : i32
    %3 = arith.cmpi eq, %arg1, %c0_i32 : i32
    %4 = arith.extui %3 : i1 to i32
    %c0_i32_1 = arith.constant 0 : i32
    %5 = arith.cmpi ne, %4, %c0_i32_1 : i32
    scf.if %5 {
      %c0_4 = arith.constant 0 : index
      %c0_5 = arith.constant 0 : index
      %9 = vector.load %arg3[%c0_4, %c0_5] : memref<64x1xf32, #tpu.memory_space<vmem>>, vector<64x1xf32>
      tpu.vector_store %arg3[%c0_4, %c0_5], %2 {strides = array<i32>} : memref<64x1xf32, #tpu.memory_space<vmem>>, vector<64x1xf32>,
    } else {
    }
    %c0_i32_2 = arith.constant 0 : i32
    %6 = arith.cmpi ne, %arg1, %c0_i32_2 : i32
    %7 = arith.extui %6 : i1 to i32
    %c0_i32_3 = arith.constant 0 : i32
    %8 = arith.cmpi ne, %7, %c0_i32_3 : i32
    scf.if %8 {
      %c0_4 = arith.constant 0 : index
      %c0_5 = arith.constant 0 : index
      %9 = vector.load %arg3[%c0_4, %c0_5] : memref<64x1xf32, #tpu.memory_space<vmem>>, vector<64x1xf32>
      %10 = arith.maximumf %9, %2 : vector<64x1xf32>
      %c0_6 = arith.constant 0 : index
      %c0_7 = arith.constant 0 : index
      %11 = vector.load %arg3[%c0_6, %c0_7] : memref<64x1xf32, #tpu.memory_space<vmem>>, vector<64x1xf32>
      tpu.vector_store %arg3[%c0_6, %c0_7], %10 {strides = array<i32>} : memref<64x1xf32, #tpu.memory_space<vmem>>, vector<64x1xf32>,
    } else {
    }
    return
  }
  func.func @transform_0(%arg0: i32, %arg1: i32) -> (i32, i32) {
    %c0_i32 = arith.constant 0 : i32
    return %arg0, %arg1 : i32, i32
  }
  func.func @transform_1(%arg0: i32, %arg1: i32) -> (i32, i32) {
    %c0_i32 = arith.constant 0 : i32
    %c0_i32_0 = arith.constant 0 : i32
    return %arg0, %c0_i32 : i32, i32
  }
}

</mosaic_0001>

<bundles_post_ra>
// kernel: maxpool.1
= control target key start
LH: loop header
LB: loop body
LE: loop exit
PB: predicated region body
PF: predicated region fallthrough
CT: control target
= control target key end

     0   :  { %6 = vsyncpa [#allocation3], 0  ;;  %s612_s0 = inlined_call_operand.hbm [shape: f32[128,16], index: 0, kind: input, shape index: {}]   ;;  %s613_s1 = inlined_call_operand.vmem [shape: f32[128,1], index: 1, kind: output, shape index: {}]  }
   0x1   :  { %8 = vsyncpa [#allocation3 + $0x1], 0  ;;  %s473_s6 = smov 0   ;;  %s475_s7 = smov 0  }
   0x2   :  { %s477_s8 = smov 0   ;;  %s479_s9 = smov 0  }
   0x3   :  { %s481_s10 = smov 0   ;;  %s483_s11 = smov 0  }
   0x4 LB: > { %s307_s12 = sadd.s32 4294967295, %s458_s11   ;;  %s26_s13 = sadd.s32 1, %s454_s10  ;;  %s458_s11 = sphi %s483_s11, %s14_s11   ;;  %s454_s10 = sphi %s481_s10, %s621_s10   ;;  %s450_s9 = sphi %s479_s9, %s620_s9   ;;  %s446_s8 = sphi %s477_s8, %s619_s8   ;;  %s442_s7 = sphi %s475_s7, %s618_s7   ;;  %s438_s6 = sphi %s473_s6, %s617_s6  }
   0x5   : > { %p28_p0 = scmp.ge.s32.totalorder %s26_s13, 2  ;;  %s35_s14 = sadd.s32 1, %s446_s8 }
   0x6   : > { %p42_p1 = scmp.ne.s32.totalorder %s446_s8, %s442_s7  ;;  %p43_p2 = scmp.eq.s32.totalorder %s458_s11, 0 }
   0x7   : > { %s623_s13 = smov (%p28_p0, %s26_s13), 0  ;;  %p48_p4 = scmp.ne.s32.totalorder %s442_s7, %s438_s6 }
   0x8   : > { %p509_p3 = por %p43_p2, %p42_p1  ;;  %s30_s16 = ssub.s32 %s454_s10, %s623_s13 }
   0x9   : > { %p49_p5 = scmp.eq.s32.totalorder %s307_s12, 0  ;;  %p33_p6 = scmp.eq.s32.totalorder %s30_s16, 0 }
   0xa   : > { %p327_p8 = scmp.lt.s32.totalorder %s458_s11, 2  ;;  %s98_s19 = sand.u32 1, %s446_s8  }
   0xb   : > { %p516_p7 = por %p49_p5, %p48_p4  ;;  %s320_s20 = sshll.u32 %s454_s10, 10 }
   0xc   : > { %s522_s18 = scalar_select %p33_p6, %s446_s8, %s35_s14  }
   0xd   : > { %s311_s21 = sshll.u32 %s98_s19, 6  ;;  %s529_s24 = scalar_lea.hbm %s612_s0, %s320_s20 }
   0xe   : > { %s102_s25 = scalar_lea.vmem [#allocation2], %s311_s21  ;;  %p533_p9 = pnand %p327_p8, %p509_p3 }
   0xf   : > { %s110_s26 = sshll.u32 %s102_s25, 4  ;;  %s539_s28 = scalar_lea.sflag [#allocation3], %s98_s19  ;;  %s537_s26 = int_to_ptr.vmem [resolvable:$true] %s110_s26 }
  0x10   : > { %s378_s29 = scalar_lea.hbm %s529_s24, 1024  ;;  %p380_p11 = pneg %p533_p9 }
  0x11   : > { %p379_p10 = scmp.ne.s32.totalorder %s529_s24, %s378_s29  ;;  %s383_s3 = scalar_lea.hbm %s612_s0, 2048 }
  0x12   : > { %p384_p0 = scmp.lt.u32.totalorder %s529_s24, %s612_s0  ;;  %p385_p1 = scmp.lt.u32.totalorder %s383_s3, %s378_s29 }
  0x13   : > { %p381_p12 = pnand %p380_p11, %p379_p10  ;;  %p387_p3 = scmp.lt.u32.totalorder %s378_s29, %s529_s24 }
  0x14   : > { %p386_p2 = por %p385_p1, %p384_p0 }
  0x15   : > { %p382_p13 = pneg %p381_p12 }
  0x16   : > { %p388_p4 = por %p387_p3, %p386_p2 }
  0x18   : > { %p389_p5 = pnand %p388_p4, %p382_p13 }
  0x1a   : > { %392 = shalt.err (!%p389_p5)
}
  0x1b   : > { %s393_s6 = scalar_lea.vmem %s537_s26, 1024  ;;  %s460_s12 = smov [#allocation2]  }
  0x1c   : > { %p394_p6 = scmp.ne.s32.totalorder %s537_s26, %s393_s6  ;;  %s398_s14 = sshll.u32 %s460_s12, 4  ;;  %s399_s14 = int_to_ptr.vmem [resolvable:$false] %s398_s14 }
  0x1d   : > { %s400_s15 = scalar_lea.vmem %s399_s14, 2048  ;;  %p401_p12 = scmp.lt.s32.totalorder %s537_s26, %s399_s14 }
  0x1e   : > { %p396_p8 = pnand %p394_p6, %p380_p11  ;;  %p402_p0 = scmp.lt.s32.totalorder %s400_s15, %s393_s6 }
  0x20   : > { %p397_p10 = pneg %p396_p8  ;;  %p403_p1 = por %p402_p0, %p401_p12 }
  0x22   : > { %p404_p2 = pnand %p403_p1, %p397_p10 }
  0x24   : > { %407 = shalt.err (!%p404_p2)
}
  0x25   : > { %s461_s16 = smov 128   ;;  %s462_s19 = smov 8  }
  0x26   : > { %326 = dma.hbm_to_vmem [thread:$0]  (!%p533_p9), %s529_s24, 1024, %s537_s26, %s539_s28, %s461_s16, %s461_s16, %s462_s19  }
  0x27   : > { %p314_p11 = scmp.ge.s32.totalorder %s458_s11, 1  ;;  %p118_p13 = scmp.lt.s32.totalorder %s458_s11, 3 }
  0x29   : > { %p119_p3 = pnand %p314_p11, %p118_p13 }
  0x2a   : > { %s124_s20 = sand.u32 (!%p119_p3), 1, %s442_s7  }
  0x2b   : > { %122 = sbr.rel (%p119_p3) target bundleno = 208 (0xd0), region = 24  ;;  %s315_s21 = sshll.u32 (!%p119_p3), %s124_s20, 6 }
  0x2c   : > { %s125_s22 = scalar_lea.sflag (!%p119_p3), [#allocation3], %s124_s20  ;;  %s128_s23 = scalar_lea.vmem (!%p119_p3), [#allocation2], %s315_s21 }
  0x32   : > { %433 = dma.done.wait (%p516_p7), %s125_s22, 1024  }
  0x33   : > { %435 = vsyncadd (%p516_p7), %s125_s22, 4294966272  ;;  %vm162_vm0 = vcmask 130048   ;;  %v156_v0 = vld [vmem:[%s128_s23 + $0x10] sm:$0xff]  ;;  %v154_v1 = vld [vmem:[%s128_s23] sm:$0xff]  ;;  %s316_s17 = sshll.u32 %s450_s9, 3  ;;  %vm191_vm1 = vcmask 7168  }
  0x34   : > { %v157_v2 = vld [vmem:[%s128_s23 + $0x18] sm:$0xff]  ;;  %v169_v3 = vsel %vm162_vm0, %v156_v0, -inf  ;;  %v163_v4 = vsel %vm162_vm0, %v154_v1, -inf  ;;  %v155_v5 = vld [vmem:[%s128_s23 + $0x8] sm:$0xff]  ;;  %v158_v9 = vld [vmem:[%s128_s23 + $0x20] sm:$0xff]  ;;  %p149_p7 = scmp.lt.s32.totalorder %s316_s17, 15 }
  0x35   : > { %170 = vmax.xlane.f32.xlu1 %v169_v3  ;;  %164 = vmax.xlane.f32.xlu0 %v163_v4  ;;  %v172_v6 = vsel %vm162_vm0, %v157_v2, -inf  ;;  %v166_v7 = vsel %vm162_vm0, %v155_v5, -inf  ;;  %v159_v8 = vld [vmem:[%s128_s23 + $0x28] sm:$0xff]  ;;  %v175_v11 = vsel %vm162_vm0, %v158_v9, -inf  ;;  %v161_v12 = vld [vmem:[%s128_s23 + $0x38] sm:$0xff]  ;;  %v160_v13 = vld [vmem:[%s128_s23 + $0x30] sm:$0xff] }
  0x36   : > { %v178_v10 = vsel %vm162_vm0, %v159_v8, -inf  ;;  %v184_v14 = vsel %vm162_vm0, %v161_v12, -inf  ;;  %v181_v15 = vsel %vm162_vm0, %v160_v13, -inf  ;;  %s625_s17 = smov (!%p149_p7, %s316_s17), 15 }
  0x37   : > { %s317_s24 = sshll.u32 %s625_s17, 3 }
  0x38   : > { %s152_s27 = scalar_lea.vmem %s613_s1, %s317_s24 }
  0x39   : > { %173 = vmax.xlane.f32.xlu1 %v172_v6  ;;  %167 = vmax.xlane.f32.xlu0 %v166_v7 }
  0x3d   : > { %179 = vmax.xlane.f32.xlu1 %v178_v10  ;;  %176 = vmax.xlane.f32.xlu0 %v175_v11 }
  0x41   : > { %185 = vmax.xlane.f32.xlu1 %v184_v14  ;;  %182 = vmax.xlane.f32.xlu0 %v181_v15 }
  0xc2   : > { %v171_v16 = vpop.xlane.xlu1 %170  ;;  %v165_v17 = vpop.xlane.xlu0 %164 }
  0xc3   : > { %194 = vst.msk [vmem:[%s152_s27 + $0x10] sm:$0xff] %vm191_vm1, %v171_v16  ;;  %192 = vst.msk [vmem:[%s152_s27] sm:$0xff] %vm191_vm1, %v165_v17 }
  0xc6   : > { %v174_v18 = vpop.xlane.xlu1 %173  ;;  %v168_v19 = vpop.xlane.xlu0 %167 }
  0xc7   : > { %195 = vst.msk [vmem:[%s152_s27 + $0x18] sm:$0xff] %vm191_vm1, %v174_v18  ;;  %193 = vst.msk [vmem:[%s152_s27 + $0x8] sm:$0xff] %vm191_vm1, %v168_v19 }
  0xca   : > { %v180_v20 = vpop.xlane.xlu1 %179  ;;  %v177_v21 = vpop.xlane.xlu0 %176 }
  0xcb   : > { %197 = vst.msk [vmem:[%s152_s27 + $0x28] sm:$0xff] %vm191_vm1, %v180_v20  ;;  %196 = vst.msk [vmem:[%s152_s27 + $0x20] sm:$0xff] %vm191_vm1, %v177_v21 }
  0xce   : > { %v186_v22 = vpop.xlane.xlu1 %185  ;;  %v183_v23 = vpop.xlane.xlu0 %182 }
  0xcf   : > { %199 = vst.msk [vmem:[%s152_s27 + $0x38] sm:$0xff] %vm191_vm1, %v186_v22  ;;  %198 = vst.msk [vmem:[%s152_s27 + $0x30] sm:$0xff] %vm191_vm1, %v183_v23 }
  0xd0 PF: > { %s14_s11 = sadd.s32 1, %s458_s11   ;;  %s617_s6 = smov %s442_s7 }
  0xd1   : > { %p11_p9 = scmp.ge.s32.totalorder %s14_s11, 4   ;;  %s618_s7 = smov %s446_s8 }
  0xd2   : > { %s619_s8 = smov %s522_s18  ;;  %s620_s9 = smov %s454_s10 }
  0xd3   : > { %s621_s10 = smov %s623_s13  ;;  %13 = sbr.rel (!%p11_p9) target bundleno = 4 (0x4), region = 72 }
  0xda   :  { %251 = vsyncpa [#allocation3], 1 }
  0xdb   :  { %253 = vsyncpa [#allocation3 + $0x1], 1 }

</bundles_post_ra>
